<compile_context>
chip_gen: v7x
topology: tpu7x:2x2x1
jax: 0.10.0
libtpu: 0.0.40
codegen_flags: <defaults>
</compile_context>

<pallas_src>
import functools

import jax
import jax.numpy as jnp
from jax.experimental import pallas as pl
from jax.experimental.pallas import tpu as pltpu

LANE = 128


def _round_up(n, m):
    return ((n + m - 1) // m) * m


def _chip_defaults():
    """(mxu_row_align, num_tensorcores) for the local TPU generation."""
    try:
        kind = jax.devices()[0].device_kind.lower()
    except Exception:
        return 128, 1
    if "v7" in kind:
        return 256, 2      # 2x256x256 MXU, 2 TensorCores per chip
    if "v6" in kind:
        return 256, 1      # 2x256x256 MXU, 1 TensorCore
    return 128, 1          # v5e/v5p and older: 128-row MXU granularity, 1 TC


def _qnet_kernel(x_ref, w1_ref, b1_ref, w2_ref, b2_ref, w3_ref, b3_ref, o_ref):
    """Fused 3-layer MLP on one batch tile. All-f32, f32 MXU accumulation."""
    h1 = jnp.dot(x_ref[...], w1_ref[...],
                 preferred_element_type=jnp.float32) + b1_ref[...]
    h1 = jnp.maximum(h1, 0.0)

    h2 = jnp.dot(h1, w2_ref[...],
                 preferred_element_type=jnp.float32) + b2_ref[...]
    h2 = jnp.maximum(h2, 0.0)

    out = jnp.dot(h2, w3_ref[...],
                  preferred_element_type=jnp.float32) + b3_ref[...]
    o_ref[...] = out.astype(o_ref.dtype)


def prepare_params(torch_layout_params):
    """One-time conversion from PyTorch layout (w: [out,in], b: [out]) to the
    kernel layout (w: [in,out] f32, b: [1,out] f32, last layer zero-padded to a
    128-lane output slab).  Do this at init / after each optimizer step, NOT in
    the forward path."""
    p = torch_layout_params
    w1 = jnp.asarray(p["w1"]).T.astype(jnp.float32)           # [in, hidden]
    b1 = jnp.asarray(p["b1"]).astype(jnp.float32)[None, :]    # [1, hidden]
    w2 = jnp.asarray(p["w2"]).T.astype(jnp.float32)           # [hidden, 128]
    b2 = jnp.asarray(p["b2"]).astype(jnp.float32)[None, :]    # [1, 128]
    w3 = jnp.asarray(p["w3"]).T.astype(jnp.float32)           # [128, out]
    b3 = jnp.asarray(p["b3"]).astype(jnp.float32)[None, :]    # [1, out]

    out_size = w3.shape[1]
    out_pad = _round_up(out_size, LANE)                       # lane-dense slab
    w3p = jnp.zeros((w3.shape[0], out_pad), jnp.float32).at[:, :out_size].set(w3)
    b3p = jnp.zeros((1, out_pad), jnp.float32).at[:, :out_size].set(b3[0])

    return {"w1": w1, "b1": b1, "w2": w2, "b2": b2, "w3": w3p, "b3": b3p}


def linear_qnet_forward(x, kparams, *, out_size, tm=None):
    """Forward pass. x: [batch, input_size] f32. kparams from prepare_params."""
    batch, in_size = x.shape
    hidden = kparams["w1"].shape[1]
    mid = kparams["w2"].shape[1]
    out_pad = kparams["w3"].shape[1]

    if tm is None:
        align, num_tc = _chip_defaults()
        if batch <= 8:
            # Single-state inference: one minimal tile, grid=(1,).
            tm = 8
        elif batch <= align:
            # Whole batch in one step; don't over-pad small batches.
            tm = _round_up(batch, 8)
        else:
            # One MXU-aligned tile per TensorCore (1 tile on v5e/v6e, 2 on
            # v7x so both TCs get a parallel grid step).  The 4096 cap only
            # bounds padding waste — VMEM is never the binding constraint.
            tm = min(4096, _round_up(pl.cdiv(batch, num_tc), align))
    tm = max(8, _round_up(tm, 8))

    padded_batch = _round_up(batch, tm)
    if padded_batch != batch:
        x = jnp.pad(x, ((0, padded_batch - batch), (0, 0)))

    # Advisory cost hint: this call is tiny; let XLA overlap it with
    # surrounding ops instead of treating it as opaque/expensive.
    flops = 2 * padded_batch * (in_size * hidden + hidden * mid + mid * out_pad)
    bytes_accessed = (
        x.size * x.dtype.itemsize
        + sum(int(a.size) * a.dtype.itemsize for a in kparams.values())
        + padded_batch * out_pad * 4
    )
    cost = pl.CostEstimate(flops=flops, transcendentals=0,
                           bytes_accessed=bytes_accessed)

    full = lambda i: (0, 0)  # weights/biases: same full-array block every step
    out = pl.pallas_call(
        _qnet_kernel,
        out_shape=jax.ShapeDtypeStruct((padded_batch, out_pad), jnp.float32),
        grid=(padded_batch // tm,),
        in_specs=[
            pl.BlockSpec((tm, in_size), lambda i: (i, 0)),
            pl.BlockSpec(kparams["w1"].shape, full),
            pl.BlockSpec(kparams["b1"].shape, full),
            pl.BlockSpec(kparams["w2"].shape, full),
            pl.BlockSpec(kparams["b2"].shape, full),
            pl.BlockSpec(kparams["w3"].shape, full),
            pl.BlockSpec(kparams["b3"].shape, full),
        ],
        out_specs=pl.BlockSpec((tm, out_pad), lambda i: (i, 0)),
        compiler_params=pltpu.CompilerParams(
            dimension_semantics=("parallel",)),   # shard batch steps across TCs
        cost_estimate=cost,
    )(x, kparams["w1"], kparams["b1"], kparams["w2"], kparams["b2"],
      kparams["w3"], kparams["b3"])

    return out[:batch, :out_size]


def init_params(key, input_size, hidden_size, output_size):
    """PyTorch nn.Linear default init: U(-1/sqrt(fan_in), 1/sqrt(fan_in))."""
    keys = jax.random.split(key, 6)

    def linear_init(kw, kb, fan_in, fan_out):
        bound = 1.0 / jnp.sqrt(jnp.float32(fan_in))
        w = jax.random.uniform(kw, (fan_out, fan_in), jnp.float32, -bound, bound)
        b = jax.random.uniform(kb, (fan_out,), jnp.float32, -bound, bound)
        return w, b

    w1, b1 = linear_init(keys[0], keys[1], input_size, hidden_size)
    w2, b2 = linear_init(keys[2], keys[3], hidden_size, 128)
    w3, b3 = linear_init(keys[4], keys[5], 128, output_size)
    return {"w1": w1, "b1": b1, "w2": w2, "b2": b2, "w3": w3, "b3": b3}


if __name__ == "__main__":
    # Snake-agent sizes: input=11 state features, hidden=32 -> 128 -> 3 actions.
    # TODO(synk): Linear_QNet.save() (torch checkpoint I/O) is host-side and
    # intentionally not part of the kernel.
    input_size, hidden_size, output_size = 11, 32, 3

    key = jax.random.PRNGKey(0)
    k_params, k_x1, k_x2 = jax.random.split(key, 3)
    params = init_params(k_params, input_size, hidden_size, output_size)

    def ref_forward(x, p):  # pure-JAX reference (PyTorch semantics)
        h = jax.nn.relu(x @ p["w1"].T + p["b1"])
        h = jax.nn.relu(h @ p["w2"].T + p["b2"])
        return h @ p["w3"].T + p["b3"]

    # One-time layout conversion (hoisted out of the forward path).
    kparams = prepare_params(params)

    fwd = jax.jit(functools.partial(linear_qnet_forward, out_size=output_size))

    # --- Tiny inference batch (batch=2 -> tm=8, single grid step) ---
    x_small = jax.random.normal(k_x1, (2, input_size), jnp.float32)
    out_small = jax.block_until_ready(fwd(x_small, kparams))
    assert out_small.shape == (2, output_size)
    assert jnp.allclose(out_small, ref_forward(x_small, params),
                        atol=1e-5, rtol=1e-5)

    # --- Replay-buffer training batch (batch=200, default chip-aware tiling:
    #     whole batch per grid step on v5e/v6e, split across TCs only on v7x) ---
    x_big = jax.random.normal(k_x2, (200, input_size), jnp.float32)
    out_big = jax.block_until_ready(fwd(x_big, kparams))
    assert out_big.shape == (200, output_size)
    assert jnp.allclose(out_big, ref_forward(x_big, params),
                        atol=1e-4, rtol=1e-4)

    # --- Larger batch exercising the MXU-aligned multi-tile path ---
    x_huge = jax.random.normal(k_x2, (1024, input_size), jnp.float32)
    out_huge = jax.block_until_ready(fwd(x_huge, kparams))
    assert out_huge.shape == (1024, output_size)
    assert jnp.allclose(out_huge, ref_forward(x_huge, params),
                        atol=1e-4, rtol=1e-4)

    print("KERNEL_OK")
</pallas_src>

<mosaic_0001>
module attributes {stable_mosaic.version = 11 : i64} {
  func.func @_qnet_kernel(%arg0: i32, %arg1: memref<8x11xf32, #tpu.memory_space<vmem>>, %arg2: memref<11x32xf32, #tpu.memory_space<vmem>>, %arg3: memref<1x32xf32, #tpu.memory_space<vmem>>, %arg4: memref<32x128xf32, #tpu.memory_space<vmem>>, %arg5: memref<1x128xf32, #tpu.memory_space<vmem>>, %arg6: memref<128x128xf32, #tpu.memory_space<vmem>>, %arg7: memref<1x128xf32, #tpu.memory_space<vmem>>, %arg8: memref<8x128xf32, #tpu.memory_space<vmem>>) attributes {dimension_semantics = [#tpu.dimension_semantics<parallel>], iteration_bounds = array<i64: 1>, scalar_prefetch = 0 : i64, scratch_operands = 0 : i64, tpu.core_type = #tpu.core_type<tc>, window_params = [{transform_indices = @transform_0, window_bounds = array<i64: 8, 11>}, {pipeline_mode = #tpu.pipeline_mode<synchronous>, transform_indices = @transform_1, window_bounds = array<i64: 11, 32>}, {pipeline_mode = #tpu.pipeline_mode<synchronous>, transform_indices = @transform_2, window_bounds = array<i64: 1, 32>}, {pipeline_mode = #tpu.pipeline_mode<synchronous>, transform_indices = @transform_3, window_bounds = array<i64: 32, 128>}, {pipeline_mode = #tpu.pipeline_mode<synchronous>, transform_indices = @transform_4, window_bounds = array<i64: 1, 128>}, {pipeline_mode = #tpu.pipeline_mode<synchronous>, transform_indices = @transform_5, window_bounds = array<i64: 128, 128>}, {pipeline_mode = #tpu.pipeline_mode<synchronous>, transform_indices = @transform_6, window_bounds = array<i64: 1, 128>}, {transform_indices = @transform_7, window_bounds = array<i64: 8, 128>}]} {
    %c0 = arith.constant 0 : index
    %c0_0 = arith.constant 0 : index
    %0 = vector.load %arg1[%c0, %c0_0] : memref<8x11xf32, #tpu.memory_space<vmem>>, vector<8x11xf32>
    %c0_1 = arith.constant 0 : index
    %c0_2 = arith.constant 0 : index
    %1 = vector.load %arg2[%c0_1, %c0_2] : memref<11x32xf32, #tpu.memory_space<vmem>>, vector<11x32xf32>
    %cst = arith.constant dense<0.000000e+00> : vector<8x32xf32>
    %2 = tpu.matmul %0, %1, %cst {dimension_numbers = #tpu.dot_dimension_numbers<[1], [0], [0], [1], [0, 0, 1, 1], [], []>} : vector<8x11xf32>, vector<11x32xf32>, vector<8x32xf32> -> vector<8x32xf32>
    %c0_3 = arith.constant 0 : index
    %c0_4 = arith.constant 0 : index
    %3 = vector.load %arg3[%c0_3, %c0_4] : memref<1x32xf32, #tpu.memory_space<vmem>>, vector<1x32xf32>
    %4 = vector.broadcast %3 : vector<1x32xf32> to vector<8x32xf32>
    %5 = arith.addf %2, %4 : vector<8x32xf32>
    %cst_5 = arith.constant 0.000000e+00 : f32
    %6 = vector.broadcast %cst_5 : f32 to vector<8x32xf32>
    %7 = arith.maximumf %5, %6 : vector<8x32xf32>
    %c0_6 = arith.constant 0 : index
    %c0_7 = arith.constant 0 : index
    %8 = vector.load %arg4[%c0_6, %c0_7] : memref<32x128xf32, #tpu.memory_space<vmem>>, vector<32x128xf32>
    %cst_8 = arith.constant dense<0.000000e+00> : vector<8x128xf32>
    %9 = tpu.matmul %7, %8, %cst_8 {dimension_numbers = #tpu.dot_dimension_numbers<[1], [0], [0], [1], [0, 0, 1, 1], [], []>} : vector<8x32xf32>, vector<32x128xf32>, vector<8x128xf32> -> vector<8x128xf32>
    %c0_9 = arith.constant 0 : index
    %c0_10 = arith.constant 0 : index
    %10 = vector.load %arg5[%c0_9, %c0_10] : memref<1x128xf32, #tpu.memory_space<vmem>>, vector<1x128xf32>
    %11 = vector.broadcast %10 : vector<1x128xf32> to vector<8x128xf32>
    %12 = arith.addf %9, %11 : vector<8x128xf32>
    %cst_11 = arith.constant 0.000000e+00 : f32
    %13 = vector.broadcast %cst_11 : f32 to vector<8x128xf32>
    %14 = arith.maximumf %12, %13 : vector<8x128xf32>
    %c0_12 = arith.constant 0 : index
    %c0_13 = arith.constant 0 : index
    %15 = vector.load %arg6[%c0_12, %c0_13] : memref<128x128xf32, #tpu.memory_space<vmem>>, vector<128x128xf32>
    %cst_14 = arith.constant dense<0.000000e+00> : vector<8x128xf32>
    %16 = tpu.matmul %14, %15, %cst_14 {dimension_numbers = #tpu.dot_dimension_numbers<[1], [0], [0], [1], [0, 0, 1, 1], [], []>} : vector<8x128xf32>, vector<128x128xf32>, vector<8x128xf32> -> vector<8x128xf32>
    %c0_15 = arith.constant 0 : index
    %c0_16 = arith.constant 0 : index
    %17 = vector.load %arg7[%c0_15, %c0_16] : memref<1x128xf32, #tpu.memory_space<vmem>>, vector<1x128xf32>
    %18 = vector.broadcast %17 : vector<1x128xf32> to vector<8x128xf32>
    %19 = arith.addf %16, %18 : vector<8x128xf32>
    %c0_17 = arith.constant 0 : index
    %c0_18 = arith.constant 0 : index
    %20 = vector.load %arg8[%c0_17, %c0_18] : memref<8x128xf32, #tpu.memory_space<vmem>>, vector<8x128xf32>
    tpu.vector_store %arg8[%c0_17, %c0_18], %19 {strides = array<i32>} : memref<8x128xf32, #tpu.memory_space<vmem>>, vector<8x128xf32>,
    return
  }
  func.func @transform_0(%arg0: i32) -> (i32, i32) {
    %c0_i32 = arith.constant 0 : i32
    %c0_i32_0 = arith.constant 0 : i32
    return %arg0, %c0_i32 : i32, i32
  }
  func.func @transform_1(%arg0: i32) -> (i32, i32) {
    %c0_i32 = arith.constant 0 : i32
    %c0_i32_0 = arith.constant 0 : i32
    %c0_i32_1 = arith.constant 0 : i32
    return %c0_i32, %c0_i32_0 : i32, i32
  }
  func.func @transform_2(%arg0: i32) -> (i32, i32) {
    %c0_i32 = arith.constant 0 : i32
    %c0_i32_0 = arith.constant 0 : i32
    %c0_i32_1 = arith.constant 0 : i32
    return %c0_i32, %c0_i32_0 : i32, i32
  }
  func.func @transform_3(%arg0: i32) -> (i32, i32) {
    %c0_i32 = arith.constant 0 : i32
    %c0_i32_0 = arith.constant 0 : i32
    %c0_i32_1 = arith.constant 0 : i32
    return %c0_i32, %c0_i32_0 : i32, i32
  }
  func.func @transform_4(%arg0: i32) -> (i32, i32) {
    %c0_i32 = arith.constant 0 : i32
    %c0_i32_0 = arith.constant 0 : i32
    %c0_i32_1 = arith.constant 0 : i32
    return %c0_i32, %c0_i32_0 : i32, i32
  }
  func.func @transform_5(%arg0: i32) -> (i32, i32) {
    %c0_i32 = arith.constant 0 : i32
    %c0_i32_0 = arith.constant 0 : i32
    %c0_i32_1 = arith.constant 0 : i32
    return %c0_i32, %c0_i32_0 : i32, i32
  }
  func.func @transform_6(%arg0: i32) -> (i32, i32) {
    %c0_i32 = arith.constant 0 : i32
    %c0_i32_0 = arith.constant 0 : i32
    %c0_i32_1 = arith.constant 0 : i32
    return %c0_i32, %c0_i32_0 : i32, i32
  }
  func.func @transform_7(%arg0: i32) -> (i32, i32) {
    %c0_i32 = arith.constant 0 : i32
    %c0_i32_0 = arith.constant 0 : i32
    return %arg0, %c0_i32 : i32, i32
  }
}

</mosaic_0001>

<bundles_post_ra>
// kernel: linear_qnet_forward.1
= control target key start
LH: loop header
LB: loop body
LE: loop exit
PB: predicated region body
PF: predicated region fallthrough
CT: control target
= control target key end

     0   :  { %12 = vsyncpa [#allocation3], 0  ;;  %s599_s0 = inlined_call_operand.vmem [shape: f32[8,11], index: 0, kind: input, shape index: {}]   ;;  %s600_s1 = inlined_call_operand.vmem [shape: f32[11,32], index: 1, kind: input, shape index: {}]   ;;  %s601_s2 = inlined_call_operand.vmem [shape: f32[1,32], index: 2, kind: input, shape index: {}]   ;;  %s602_s3 = inlined_call_operand.hbm [shape: f32[32,128], index: 3, kind: input, shape index: {}]   ;;  %s603_s4 = inlined_call_operand.vmem [shape: f32[1,128], index: 4, kind: input, shape index: {}]   ;;  %s604_s5 = inlined_call_operand.hbm [shape: f32[128,128], index: 5, kind: input, shape index: {}]   ;;  %s605_s6 = inlined_call_operand.vmem [shape: f32[1,128], index: 6, kind: input, shape index: {}]   ;;  %s606_s7 = inlined_call_operand.vmem [shape: f32[8,128], index: 7, kind: output, shape index: {}]  }
   0x1   :  { %13 = vsyncpa [#allocation5], 0  ;;  %s503_s24 = smov [#allocation2]   ;;  %s455_s28 = scalar_lea.hbm %s602_s3, 512 }
   0x2   :  { %s25_s25 = sshll.u32 %s503_s24, 4  ;;  %p456_p0 = scmp.ne.s32.totalorder %s602_s3, %s455_s28  ;;  %s26_s25 = int_to_ptr.vmem [resolvable:$true] %s25_s25 }
   0x3   :  { %p459_p1 = scmp.lt.u32.totalorder %s455_s28, %s602_s3 }
   0x5   :  { %p461_p2 = pnand %p459_p1, %p456_p0 }
   0x7   :  { %464 = shalt.err (!%p461_p2)
}
   0x8   :  { %s465_s10 = scalar_lea.vmem %s26_s25, 512  ;;  %p470_p4 = scmp.lt.s32.totalorder %s26_s25, %s26_s25 }
   0x9   :  { %p466_p3 = scmp.ne.s32.totalorder %s26_s25, %s465_s10  ;;  %p471_p5 = scmp.lt.s32.totalorder %s465_s10, %s465_s10 }
   0xb   :  { %p472_p6 = por %p471_p5, %p470_p4 }
   0xd   :  { %p473_p7 = pnand %p472_p6, %p466_p3 }
   0xf   :  { %476 = shalt.err (!%p473_p7)
}
  0x10   :  { %s504_s11 = smov 128   ;;  %s505_s12 = smov 8  }
  0x11   :  { %31 = dma.hbm_to_vmem [thread:$0]  %s602_s3, 512, %s26_s25, [#allocation3], %s504_s11, %s504_s11, %s505_s12  }
  0x12   :  { %s506_s15 = smov [#allocation4]   ;;  %s477_s19 = scalar_lea.hbm %s604_s5, 2048 }
  0x13   :  { %s39_s16 = sshll.u32 %s506_s15, 4  ;;  %p478_p8 = scmp.ne.s32.totalorder %s604_s5, %s477_s19  ;;  %s40_s16 = int_to_ptr.vmem [resolvable:$true] %s39_s16 }
  0x14   :  { %p481_p9 = scmp.lt.u32.totalorder %s477_s19, %s604_s5 }
  0x16   :  { %p483_p10 = pnand %p481_p9, %p478_p8 }
  0x18   :  { %486 = shalt.err (!%p483_p10)
}
  0x19   :  { %s487_s24 = scalar_lea.vmem %s40_s16, 2048  ;;  %p492_p12 = scmp.lt.s32.totalorder %s40_s16, %s40_s16 }
  0x1a   :  { %p488_p11 = scmp.ne.s32.totalorder %s40_s16, %s487_s24  ;;  %p493_p13 = scmp.lt.s32.totalorder %s487_s24, %s487_s24 }
  0x1c   :  { %p494_p0 = por %p493_p13, %p492_p12 }
  0x1e   :  { %p495_p1 = pnand %p494_p0, %p488_p11 }
  0x20   :  { %498 = shalt.err (!%p495_p1)
}
  0x21   :  { %45 = dma.hbm_to_vmem [thread:$0]  %s604_s5, 2048, %s40_s16, [#allocation5], %s504_s11, %s504_s11, %s505_s12  }
  0x22   :  { %499 = dma.done.wait [#allocation3], 512  }
  0x23   :  { %500 = vsyncadd [#allocation3], 4294966784 }
  0x24   :  { %501 = dma.done.wait [#allocation5], 2048  }
  0x25   :  { %502 = vsyncadd [#allocation5], 4294965248  ;;  %v507_v0 = vmov 0.0|0.0   ;;  %vm508_vm0 = vmmov 0   ;;  %v509_v1 = vmov 0.0   ;;  %vm68_vm1 = vcmask 1042432  }
  0x26   :  { %413 = vmatprep.subr.bf16.mxu1 %v507_v0  ;;  %423 = vmatprep.subr.bf16.mxu0 %v507_v0  ;;  %v55_v2 = vld [vmem:[%s600_s1] sm:$0xff]  ;;  %v56_v3 = vld [vmem:[%s600_s1 + $0x8] sm:$0x7]  ;;  %vm510_vm2 = vmmov 1   ;;  %v143_v5 = vld [vmem:[#allocation2] sm:$0xff]  ;;  %vm64_vm4 = vcmask 89088  }
  0x27   :  { %364 = vmatprep.mubr.msk.f32.mxu1 %vm508_vm0, %v509_v1  ;;  %410 = vmatprep.mubr.msk.f32.mxu0 %vm508_vm0, %v509_v1  ;;  %vm415_vm3 = vmpackc.low %vm68_vm1, %vm510_vm2  ;;  %v414_v4 = vpack.c.bf16 %v56_v3, %v55_v2  ;;  %v144_v6 = vld [vmem:[#allocation2 + $0x8] sm:$0xff]  ;;  %v54_v7 = vld [vmem:[%s599_s0] sm:$0xff]  ;;  %vm154_vm5 = vcmask 261120  }
  0x28   :  { %v418_v8 = vpack.c.bf16 %v144_v6, %v143_v5  ;;  %v145_v9 = vld [vmem:[#allocation2 + $0x10] sm:$0xff]  ;;  %v146_v10 = vld [vmem:[#allocation2 + $0x18] sm:$0xff]  ;;  %v229_v12 = vld [vmem:[#allocation4] sm:$0xff] }
  0x29   :  { %416 = vmatpush3.bf16.msk.msra.mxu1 %vm415_vm3, %v414_v4  ;;  %v421_v11 = vpack.c.bf16 %v146_v10, %v145_v9  ;;  %v230_v13 = vld [vmem:[#allocation4 + $0x8] sm:$0xff]  ;;  %v231_v14 = vld [vmem:[#allocation4 + $0x10] sm:$0xff]  ;;  %v232_v16 = vld [vmem:[#allocation4 + $0x18] sm:$0xff] }
  0x2a   :  { %417 = vmatprep.subr.bf16.mxu1 %v507_v0  ;;  %v424_v15 = vpack.c.bf16 %v230_v13, %v229_v12  ;;  %v427_v17 = vpack.c.bf16 %v232_v16, %v231_v14  ;;  %v233_v18 = vld [vmem:[#allocation4 + $0x20] sm:$0xff]  ;;  %v234_v19 = vld [vmem:[#allocation4 + $0x28] sm:$0xff]  ;;  %v235_v21 = vld [vmem:[#allocation4 + $0x30] sm:$0xff] }
  0x2b   :  { %v430_v20 = vpack.c.bf16 %v234_v19, %v233_v18  ;;  %v236_v22 = vld [vmem:[#allocation4 + $0x38] sm:$0xff]  ;;  %v237_v24 = vld [vmem:[#allocation4 + $0x40] sm:$0xff]  ;;  %v238_v25 = vld [vmem:[#allocation4 + $0x48] sm:$0xff] }
  0x2c   :  { %365 = vmatmul.mubr.msk.f32.vlgmr.msra.gmra.mrb[0].mxu1 %vm64_vm4, %v54_v7  ;;  %425 = vmatpush3.bf16.msra.mxu0 %v424_v15  ;;  %v433_v23 = vpack.c.bf16 %v236_v22, %v235_v21  ;;  %v436_v26 = vpack.c.bf16 %v238_v25, %v237_v24  ;;  %v239_v27 = vld [vmem:[#allocation4 + $0x50] sm:$0xff]  ;;  %v240_v28 = vld [vmem:[#allocation4 + $0x58] sm:$0xff]  ;;  %v241_v30 = vld [vmem:[#allocation4 + $0x60] sm:$0xff] }
  0x2d   :  { %419 = vmatpush3.bf16.msra.mxu1 %v418_v8  ;;  %375 = vmatprep.mubr.msk.f32.mxu1 %vm508_vm0, %v509_v1  ;;  %v439_v29 = vpack.c.bf16 %v240_v28, %v239_v27  ;;  %v242_v31 = vld [vmem:[#allocation4 + $0x68] sm:$0xff]  ;;  %v329_v33 = vld [vmem:[%s601_s2] ss:$0 sm:$0xff]  ;;  %v244_v39 = vld [vmem:[#allocation4 + $0x78] sm:$0xff] }
  0x2e   :  { %420 = vmatprep.subr.bf16.mxu1 %v507_v0  ;;  %426 = vmatprep.subr.bf16.mxu0 %v507_v0  ;;  %v442_v32 = vpack.c.bf16 %v242_v31, %v241_v30  ;;  %v243_v38 = vld [vmem:[#allocation4 + $0x70] sm:$0xff] }
  0x2f   :  { %v445_v40 = vpack.c.bf16 %v244_v39, %v243_v38  ;;  %v332_v41 = vld [vmem:[%s603_s4] ss:$0 sm:$0xff] }
  0x30   :  { %428 = vmatpush3.bf16.msra.mxu0 %v427_v17  ;;  %v334_v46 = vld [vmem:[%s605_s6] ss:$0 sm:$0xff] }
  0x31   :  { %422 = vmatpush3.bf16.msra.mxu1 %v421_v11  ;;  %429 = vmatprep.subr.bf16.mxu0 %v507_v0 }
  0x34   :  { %431 = vmatpush3.bf16.msra.mxu0 %v430_v20 }
  0x35   :  { %432 = vmatprep.subr.bf16.mxu0 %v507_v0 }
  0x38   :  { %434 = vmatpush3.bf16.msra.mxu0 %v433_v23 }
  0x39   :  { %435 = vmatprep.subr.bf16.mxu0 %v507_v0 }
  0x3c   :  { %437 = vmatpush3.bf16.msra.mxu0 %v436_v26 }
  0x3d   :  { %438 = vmatprep.subr.bf16.mxu0 %v507_v0 }
  0x40   :  { %440 = vmatpush3.bf16.msra.mxu0 %v439_v29 }
  0x41   :  { %441 = vmatprep.subr.bf16.mxu0 %v507_v0 }
  0x44   :  { %443 = vmatpush3.bf16.msra.mxu0 %v442_v32 }
  0x45   :  { %444 = vmatprep.subr.bf16.mxu0 %v507_v0 }
  0x48   :  { %446 = vmatpush3.bf16.msra.mxu0 %v445_v40 }
  0xff   :  { %v138_v34 = vpop.f32.mrb[0].mxu1 }
 0x100   :  { %v139_v35 = vadd.f32 %v329_v33, %v138_v34  ;;  %v366_v36 = vpop.f32.mrb[1].mxu1 }
 0x102   :  { %v142_v37 = vmax.f32 %v139_v35, 0.0 }
 0x104   :  { %376 = vmatmul.mubr.msk.f32.vlgmr.msra.gmra.mrb[2].mxu1 %vm154_vm5, %v142_v37 }
 0x1d7   :  { %v224_v42 = vpop.f32.mrb[2].mxu1 }
 0x1d8   :  { %v225_v43 = vadd.f32 %v332_v41, %v224_v42  ;;  %v377_v44 = vpop.f32.mrb[3].mxu1 }
 0x1da   :  { %v228_v45 = vmax.f32 %v225_v43, 0.0 }
 0x1dc   :  { %411 = vmatmul.mubr.f32.vlgmr.msra.gmra.mrb[0].mxu0 %v228_v45 }
 0x2af   :  { %v318_v47 = vpop.f32.mrb[0].mxu0 }
 0x2b0   :  { %v319_v48 = vadd.f32 %v334_v46, %v318_v47  ;;  %v412_v49 = vpop.f32.mrb[1].mxu0 }
 0x2b2   :  { %322 = vst [vmem:[%s606_s7] sm:$0xff] %v319_v48 }
 0x2b3   :  { %327 = vsyncpa [#allocation3], 1 }
 0x2b4   :  { %328 = vsyncpa [#allocation5], 1 }

</bundles_post_ra>
